<compile_context>
chip_gen: v7x
topology: tpu7x:2x2x1
jax: 0.10.0
libtpu: 0.0.40
codegen_flags: <defaults>
</compile_context>

<pallas_src>
import jax
import jax.numpy as jnp
from jax.experimental import pallas as pl
from jax.experimental.pallas import tpu as pltpu

EPS = 1e-5  # BatchNorm2d default eps


def _round_up(x, m):
    return (x + m - 1) // m * m


def _vmem_budget_bytes():
    """Per-generation scoped-VMEM budget: ~75% of physical, capped at 112 MiB."""
    try:
        phys = int(pltpu.get_tpu_info().vmem_capacity_bytes)
    except Exception:
        phys = 64 * 1024 * 1024  # conservative fallback (v7x per-TensorCore VMEM)
    return max(32 * 1024 * 1024, min(phys * 3 // 4, 112 * 1024 * 1024))


_VMEM_LIMIT = _vmem_budget_bytes()


def _derive_tile_m(m, kp, coutp, vmem_budget):
    """Pick tM from the VMEM budget (double-buffered pipeline + in-kernel f32 temps)."""
    # Bytes that scale with tM:
    #   patches in  (bf16, double-buffered): 2 * 4 * Kp * 2
    #   pass-2 out  (f32,  double-buffered): 2 * Coutp * 4
    #   in-kernel f32 temps (y0, y*s+b, running max, headroom): ~4 * Coutp * 4
    per_tm = 16 * kp + 8 * coutp + 16 * coutp
    # Fixed: double-buffered weight + scale/shift vectors + slack for compiler temporaries.
    fixed = 2 * (kp * coutp * 2) + 4 * (coutp * 4) + (2 << 20)
    tm = max(8, (vmem_budget - fixed) // per_tm)
    tm = min(tm, 4096, _round_up(m, 8))     # per-step overhead is amortized well before 4096
    if m > 8:                               # keep >= 2 grid steps (v7x megacore sharding)
        tm = min(tm, _round_up((m + 1) // 2, 8))
    tm = max(8, (tm // 8) * 8)
    return int(tm)


# ---------------- Pass 1: conv-as-matmul -> per-tile BN partial stats only ----------------
def conv_stats_kernel(patches_ref, w_ref, psum_ref, psumsq_ref):
    # patches_ref: (4, tM, Kp) bf16   -- 4 = pooling offsets of the same output pixel
    # w_ref:       (Kp, Coutp) bf16
    # psum_ref / psumsq_ref: (1, 1, Coutp) f32 -- per-tile channel partial stats
    w = w_ref[...]
    coutp = w.shape[1]
    s = jnp.zeros((1, coutp), jnp.float32)
    ss = jnp.zeros((1, coutp), jnp.float32)
    for i in range(4):  # static unroll; bounds f32 temporaries to one (tM, Coutp) block
        y0 = jnp.dot(patches_ref[i], w, preferred_element_type=jnp.float32)
        s = s + jnp.sum(y0, axis=0, keepdims=True)
        ss = ss + jnp.sum(y0 * y0, axis=0, keepdims=True)
    psum_ref[0] = s
    psumsq_ref[0] = ss


# -------- Pass 2: recompute conv matmul + folded BN (scale/shift) + ReLU + 2x2 pool --------
def conv_bn_relu_pool_kernel(patches_ref, w_ref, scale_ref, shift_ref, out_ref):
    # patches_ref: (4, tM, Kp) bf16 ; scale/shift: (1, Coutp) f32 ; out_ref: (tM, Coutp) f32
    w = w_ref[...]
    sc = scale_ref[...]
    sh = shift_ref[...]
    acc = None
    for i in range(4):
        y0 = jnp.dot(patches_ref[i], w, preferred_element_type=jnp.float32)
        z = jnp.maximum(y0 * sc + sh, 0.0)
        acc = z if acc is None else jnp.maximum(acc, z)
    out_ref[...] = acc


@jax.jit
def downsample_block(x, conv_w, conv_b, gamma, beta):
    """x: (N, Cin, H, W) f32 NCHW. Returns (N, Cout, H/2, W/2) f32 NCHW."""
    N, Cin, H, W = x.shape
    Cout = conv_w.shape[0]
    assert H % 2 == 0 and W % 2 == 0, "MaxPool2d(2) path assumes even H, W"
    Ho, Wo = H // 2, W // 2
    M = N * Ho * Wo
    K = 9 * Cin
    Kp = _round_up(K, 16)         # bf16 sublane tile; avoids 128-lane zero padding in HBM
    Coutp = _round_up(Cout, 128)  # lane-dense output store (keep padded; narrow stores regress)

    tM = _derive_tile_m(M, Kp, Coutp, _VMEM_LIMIT)
    Mp = _round_up(M, tM)
    nT = Mp // tM
    grid = (nT,)

    # ---- glue: bf16 pad + im2col + pooling-offset split (layout-only XLA work) ----
    # TODO(synk): build the patch tile in-kernel from a haloed NHWC block via manual DMA to
    #             remove this ~9x HBM expansion entirely.
    xb = x.astype(jnp.bfloat16)                                 # cast FIRST: glue moves bf16
    xp = jnp.pad(xb, ((0, 0), (0, 0), (1, 1), (1, 1)))
    xp = jnp.transpose(xp, (0, 2, 3, 1))                        # (N, H+2, W+2, Cin)
    cols = [xp[:, kh:kh + H, kw:kw + W, :] for kh in range(3) for kw in range(3)]
    patches = jnp.concatenate(cols, axis=-1)                    # (N, H, W, K), order (kh,kw,cin)
    patches = patches.reshape(N, Ho, 2, Wo, 2, K)
    patches = jnp.transpose(patches, (2, 4, 0, 1, 3, 5)).reshape(4, M, K)
    # Zero-pad K (sublane align) and M (tile multiple). Zero rows produce y0 == 0 so they
    # contribute nothing to psum/psumsq and are sliced off in the epilogue.
    patches = jnp.pad(patches, ((0, 0), (0, Mp - M), (0, Kp - K)))

    # PyTorch conv weight (Cout, Cin, 3, 3) -> (kh, kw, cin, cout) -> (K, Cout), then pad.
    w2 = jnp.transpose(conv_w, (2, 3, 1, 0)).reshape(K, Cout).astype(jnp.float32)
    w2 = jnp.pad(w2, ((0, Kp - K), (0, Coutp - Cout))).astype(jnp.bfloat16)
    g2 = jnp.pad(gamma.astype(jnp.float32), (0, Coutp - Cout), constant_values=1.0)
    be2 = jnp.pad(beta.astype(jnp.float32), (0, Coutp - Cout))

    # ---- pass 1: tiled conv matmul -> per-channel partial BN stats (no y writeback) ----
    psum, psumsq = pl.pallas_call(
        conv_stats_kernel,
        out_shape=(
            jax.ShapeDtypeStruct((nT, 1, Coutp), jnp.float32),
            jax.ShapeDtypeStruct((nT, 1, Coutp), jnp.float32),
        ),
        grid=grid,
        in_specs=[
            pl.BlockSpec((4, tM, Kp), lambda i: (0, i, 0)),
            pl.BlockSpec((Kp, Coutp), lambda i: (0, 0)),
        ],
        out_specs=[
            pl.BlockSpec((1, 1, Coutp), lambda i: (i, 0, 0)),
            pl.BlockSpec((1, 1, Coutp), lambda i: (i, 0, 0)),
        ],
        compiler_params=pltpu.CompilerParams(
            dimension_semantics=("parallel",),
            vmem_limit_bytes=_VMEM_LIMIT),
    )(patches, w2)

    # ---- tiny glue: fold training-mode BN (biased variance) into one scale/shift FMA ----
    # Conv bias cancels exactly under training-mode BN (it only shifts the batch mean that
    # is immediately subtracted), so conv_b is not needed in the forward compute path.
    n_total = jnp.float32(4 * M)                         # = N*H*W elements per channel
    mean0 = psum.sum(axis=0).reshape(Coutp) / n_total    # mean of (pre-bias) conv output
    ex2 = psumsq.sum(axis=0).reshape(Coutp) / n_total
    var = jnp.maximum(ex2 - mean0 * mean0, 0.0)          # bias-shift-invariant variance
    scale_v = g2 * jax.lax.rsqrt(var + EPS)
    shift_v = be2 - mean0 * scale_v
    scale = scale_v.reshape(1, Coutp)
    shift = shift_v.reshape(1, Coutp)

    # ---- pass 2: recompute conv matmul + scale/shift + ReLU + 2x2 max-pool ----
    out = pl.pallas_call(
        conv_bn_relu_pool_kernel,
        out_shape=jax.ShapeDtypeStruct((Mp, Coutp), jnp.float32),
        grid=grid,
        in_specs=[
            pl.BlockSpec((4, tM, Kp), lambda i: (0, i, 0)),
            pl.BlockSpec((Kp, Coutp), lambda i: (0, 0)),
            pl.BlockSpec((1, Coutp), lambda i: (0, 0)),
            pl.BlockSpec((1, Coutp), lambda i: (0, 0)),
        ],
        out_specs=pl.BlockSpec((tM, Coutp), lambda i: (i, 0)),
        compiler_params=pltpu.CompilerParams(
            dimension_semantics=("parallel",),
            vmem_limit_bytes=_VMEM_LIMIT),
    )(patches, w2, scale, shift)

    out = out[:M, :Cout].reshape(N, Ho, Wo, Cout)
    return jnp.transpose(out, (0, 3, 1, 2))              # back to NCHW (module interface)


if __name__ == "__main__":
    key = jax.random.PRNGKey(0)
    k_x, k_w, k_b = jax.random.split(key, 3)

    N, Cin, Cout, H, W = 2, 4, 8, 16, 16
    x = jax.random.normal(k_x, (N, Cin, H, W), dtype=jnp.float32)

    # Deterministic synthetic parameters (Conv2d weight/bias + fresh BatchNorm2d affine).
    conv_w = 0.1 * jax.random.normal(k_w, (Cout, Cin, 3, 3), dtype=jnp.float32)
    conv_b = 0.1 * jax.random.normal(k_b, (Cout,), dtype=jnp.float32)
    gamma = jnp.ones((Cout,), dtype=jnp.float32)   # BatchNorm2d default weight
    beta = jnp.zeros((Cout,), dtype=jnp.float32)   # BatchNorm2d default bias

    yout = downsample_block(x, conv_w, conv_b, gamma, beta)
    jax.block_until_ready(yout)
    assert yout.shape == (N, Cout, H // 2, W // 2)
    print("KERNEL_OK")
</pallas_src>

<mosaic_0001>
module attributes {stable_mosaic.version = 11 : i64} {
  func.func @conv_stats_kernel(%arg0: i32, %arg1: memref<4x64x48xbf16, #tpu.memory_space<vmem>>, %arg2: memref<48x128xbf16, #tpu.memory_space<vmem>>, %arg3: memref<1x1x128xf32, #tpu.memory_space<vmem>>, %arg4: memref<1x1x128xf32, #tpu.memory_space<vmem>>) attributes {dimension_semantics = [#tpu.dimension_semantics<parallel>], iteration_bounds = array<i64: 2>, scalar_prefetch = 0 : i64, scratch_operands = 0 : i64, tpu.core_type = #tpu.core_type<tc>, window_params = [{transform_indices = @transform_0, window_bounds = array<i64: 4, 64, 48>}, {pipeline_mode = #tpu.pipeline_mode<synchronous>, transform_indices = @transform_1, window_bounds = array<i64: 48, 128>}, {transform_indices = @transform_2, window_bounds = array<i64: 1, 1, 128>}, {transform_indices = @transform_3, window_bounds = array<i64: 1, 1, 128>}]} {
    %c0 = arith.constant 0 : index
    %c0_0 = arith.constant 0 : index
    %0 = vector.load %arg2[%c0, %c0_0] : memref<48x128xbf16, #tpu.memory_space<vmem>>, vector<48x128xbf16>
    %cst = arith.constant 0.000000e+00 : f32
    %1 = vector.broadcast %cst : f32 to vector<1x128xf32>
    %cst_1 = arith.constant 0.000000e+00 : f32
    %2 = vector.broadcast %cst_1 : f32 to vector<1x128xf32>
    %c0_2 = arith.constant 0 : index
    %c0_3 = arith.constant 0 : index
    %c0_4 = arith.constant 0 : index
    %3 = vector.load %arg1[%c0_2, %c0_3, %c0_4] : memref<4x64x48xbf16, #tpu.memory_space<vmem>>, vector<1x64x48xbf16>
    %4 = vector.shape_cast %3 : vector<1x64x48xbf16> to vector<64x48xbf16>
    %cst_5 = arith.constant dense<0.000000e+00> : vector<64x128xf32>
    %5 = tpu.matmul %4, %0, %cst_5 {dimension_numbers = #tpu.dot_dimension_numbers<[1], [0], [0], [1], [0, 0, 1, 1], [], []>} : vector<64x48xbf16>, vector<48x128xbf16>, vector<64x128xf32> -> vector<64x128xf32>
    %cst_6 = arith.constant dense<0.000000e+00> : vector<128xf32>
    %6 = vector.multi_reduction <add>, %5, %cst_6 [0] : vector<64x128xf32> to vector<128xf32>
    %7 = vector.shape_cast %6 : vector<128xf32> to vector<1x128xf32>
    %8 = arith.addf %1, %7 : vector<1x128xf32>
    %9 = arith.mulf %5, %5 : vector<64x128xf32>
    %cst_7 = arith.constant dense<0.000000e+00> : vector<128xf32>
    %10 = vector.multi_reduction <add>, %9, %cst_7 [0] : vector<64x128xf32> to vector<128xf32>
    %11 = vector.shape_cast %10 : vector<128xf32> to vector<1x128xf32>
    %12 = arith.addf %2, %11 : vector<1x128xf32>
    %c1 = arith.constant 1 : index
    %c0_8 = arith.constant 0 : index
    %c0_9 = arith.constant 0 : index
    %13 = vector.load %arg1[%c1, %c0_8, %c0_9] : memref<4x64x48xbf16, #tpu.memory_space<vmem>>, vector<1x64x48xbf16>
    %14 = vector.shape_cast %13 : vector<1x64x48xbf16> to vector<64x48xbf16>
    %cst_10 = arith.constant dense<0.000000e+00> : vector<64x128xf32>
    %15 = tpu.matmul %14, %0, %cst_10 {dimension_numbers = #tpu.dot_dimension_numbers<[1], [0], [0], [1], [0, 0, 1, 1], [], []>} : vector<64x48xbf16>, vector<48x128xbf16>, vector<64x128xf32> -> vector<64x128xf32>
    %cst_11 = arith.constant dense<0.000000e+00> : vector<128xf32>
    %16 = vector.multi_reduction <add>, %15, %cst_11 [0] : vector<64x128xf32> to vector<128xf32>
    %17 = vector.shape_cast %16 : vector<128xf32> to vector<1x128xf32>
    %18 = arith.addf %8, %17 : vector<1x128xf32>
    %19 = arith.mulf %15, %15 : vector<64x128xf32>
    %cst_12 = arith.constant dense<0.000000e+00> : vector<128xf32>
    %20 = vector.multi_reduction <add>, %19, %cst_12 [0] : vector<64x128xf32> to vector<128xf32>
    %21 = vector.shape_cast %20 : vector<128xf32> to vector<1x128xf32>
    %22 = arith.addf %12, %21 : vector<1x128xf32>
    %c2 = arith.constant 2 : index
    %c0_13 = arith.constant 0 : index
    %c0_14 = arith.constant 0 : index
    %23 = vector.load %arg1[%c2, %c0_13, %c0_14] : memref<4x64x48xbf16, #tpu.memory_space<vmem>>, vector<1x64x48xbf16>
    %24 = vector.shape_cast %23 : vector<1x64x48xbf16> to vector<64x48xbf16>
    %cst_15 = arith.constant dense<0.000000e+00> : vector<64x128xf32>
    %25 = tpu.matmul %24, %0, %cst_15 {dimension_numbers = #tpu.dot_dimension_numbers<[1], [0], [0], [1], [0, 0, 1, 1], [], []>} : vector<64x48xbf16>, vector<48x128xbf16>, vector<64x128xf32> -> vector<64x128xf32>
    %cst_16 = arith.constant dense<0.000000e+00> : vector<128xf32>
    %26 = vector.multi_reduction <add>, %25, %cst_16 [0] : vector<64x128xf32> to vector<128xf32>
    %27 = vector.shape_cast %26 : vector<128xf32> to vector<1x128xf32>
    %28 = arith.addf %18, %27 : vector<1x128xf32>
    %29 = arith.mulf %25, %25 : vector<64x128xf32>
    %cst_17 = arith.constant dense<0.000000e+00> : vector<128xf32>
    %30 = vector.multi_reduction <add>, %29, %cst_17 [0] : vector<64x128xf32> to vector<128xf32>
    %31 = vector.shape_cast %30 : vector<128xf32> to vector<1x128xf32>
    %32 = arith.addf %22, %31 : vector<1x128xf32>
    %c3 = arith.constant 3 : index
    %c0_18 = arith.constant 0 : index
    %c0_19 = arith.constant 0 : index
    %33 = vector.load %arg1[%c3, %c0_18, %c0_19] : memref<4x64x48xbf16, #tpu.memory_space<vmem>>, vector<1x64x48xbf16>
    %34 = vector.shape_cast %33 : vector<1x64x48xbf16> to vector<64x48xbf16>
    %cst_20 = arith.constant dense<0.000000e+00> : vector<64x128xf32>
    %35 = tpu.matmul %34, %0, %cst_20 {dimension_numbers = #tpu.dot_dimension_numbers<[1], [0], [0], [1], [0, 0, 1, 1], [], []>} : vector<64x48xbf16>, vector<48x128xbf16>, vector<64x128xf32> -> vector<64x128xf32>
    %cst_21 = arith.constant dense<0.000000e+00> : vector<128xf32>
    %36 = vector.multi_reduction <add>, %35, %cst_21 [0] : vector<64x128xf32> to vector<128xf32>
    %37 = vector.shape_cast %36 : vector<128xf32> to vector<1x128xf32>
    %38 = arith.addf %28, %37 : vector<1x128xf32>
    %39 = arith.mulf %35, %35 : vector<64x128xf32>
    %cst_22 = arith.constant dense<0.000000e+00> : vector<128xf32>
    %40 = vector.multi_reduction <add>, %39, %cst_22 [0] : vector<64x128xf32> to vector<128xf32>
    %41 = vector.shape_cast %40 : vector<128xf32> to vector<1x128xf32>
    %42 = arith.addf %32, %41 : vector<1x128xf32>
    %c0_23 = arith.constant 0 : index
    %c0_24 = arith.constant 0 : index
    %c0_25 = arith.constant 0 : index
    %43 = vector.load %arg3[%c0_23, %c0_24, %c0_25] : memref<1x1x128xf32, #tpu.memory_space<vmem>>, vector<1x1x128xf32>
    %44 = vector.shape_cast %43 : vector<1x1x128xf32> to vector<1x128xf32>
    %45 = vector.shape_cast %38 : vector<1x128xf32> to vector<1x1x128xf32>
    tpu.vector_store %arg3[%c0_23, %c0_24, %c0_25], %45 {strides = array<i32>} : memref<1x1x128xf32, #tpu.memory_space<vmem>>, vector<1x1x128xf32>,
    %c0_26 = arith.constant 0 : index
    %c0_27 = arith.constant 0 : index
    %c0_28 = arith.constant 0 : index
    %46 = vector.load %arg4[%c0_26, %c0_27, %c0_28] : memref<1x1x128xf32, #tpu.memory_space<vmem>>, vector<1x1x128xf32>
    %47 = vector.shape_cast %46 : vector<1x1x128xf32> to vector<1x128xf32>
    %48 = vector.shape_cast %42 : vector<1x128xf32> to vector<1x1x128xf32>
    tpu.vector_store %arg4[%c0_26, %c0_27, %c0_28], %48 {strides = array<i32>} : memref<1x1x128xf32, #tpu.memory_space<vmem>>, vector<1x1x128xf32>,
    return
  }
  func.func @transform_0(%arg0: i32) -> (i32, i32, i32) {
    %c0_i32 = arith.constant 0 : i32
    %c0_i32_0 = arith.constant 0 : i32
    %c0_i32_1 = arith.constant 0 : i32
    return %c0_i32, %arg0, %c0_i32_0 : i32, i32, i32
  }
  func.func @transform_1(%arg0: i32) -> (i32, i32) {
    %c0_i32 = arith.constant 0 : i32
    %c0_i32_0 = arith.constant 0 : i32
    %c0_i32_1 = arith.constant 0 : i32
    return %c0_i32, %c0_i32_0 : i32, i32
  }
  func.func @transform_2(%arg0: i32) -> (i32, i32, i32) {
    %c0_i32 = arith.constant 0 : i32
    %c0_i32_0 = arith.constant 0 : i32
    %c0_i32_1 = arith.constant 0 : i32
    return %arg0, %c0_i32, %c0_i32_0 : i32, i32, i32
  }
  func.func @transform_3(%arg0: i32) -> (i32, i32, i32) {
    %c0_i32 = arith.constant 0 : i32
    %c0_i32_0 = arith.constant 0 : i32
    %c0_i32_1 = arith.constant 0 : i32
    return %arg0, %c0_i32, %c0_i32_0 : i32, i32, i32
  }
}

module attributes {stable_mosaic.version = 11 : i64} {
  func.func @conv_bn_relu_pool_kernel(%arg0: i32, %arg1: memref<4x64x48xbf16, #tpu.memory_space<vmem>>, %arg2: memref<48x128xbf16, #tpu.memory_space<vmem>>, %arg3: memref<1x128xf32, #tpu.memory_space<vmem>>, %arg4: memref<1x128xf32, #tpu.memory_space<vmem>>, %arg5: memref<64x128xf32, #tpu.memory_space<vmem>>) attributes {dimension_semantics = [#tpu.dimension_semantics<parallel>], iteration_bounds = array<i64: 2>, scalar_prefetch = 0 : i64, scratch_operands = 0 : i64, tpu.core_type = #tpu.core_type<tc>, window_params = [{transform_indices = @transform_0, window_bounds = array<i64: 4, 64, 48>}, {pipeline_mode = #tpu.pipeline_mode<synchronous>, transform_indices = @transform_1, window_bounds = array<i64: 48, 128>}, {pipeline_mode = #tpu.pipeline_mode<synchronous>, transform_indices = @transform_2, window_bounds = array<i64: 1, 128>}, {pipeline_mode = #tpu.pipeline_mode<synchronous>, transform_indices = @transform_3, window_bounds = array<i64: 1, 128>}, {transform_indices = @transform_4, window_bounds = array<i64: 64, 128>}]} {
    %c0 = arith.constant 0 : index
    %c0_0 = arith.constant 0 : index
    %0 = vector.load %arg2[%c0, %c0_0] : memref<48x128xbf16, #tpu.memory_space<vmem>>, vector<48x128xbf16>
    %c0_1 = arith.constant 0 : index
    %c0_2 = arith.constant 0 : index
    %1 = vector.load %arg3[%c0_1, %c0_2] : memref<1x128xf32, #tpu.memory_space<vmem>>, vector<1x128xf32>
    %c0_3 = arith.constant 0 : index
    %c0_4 = arith.constant 0 : index
    %2 = vector.load %arg4[%c0_3, %c0_4] : memref<1x128xf32, #tpu.memory_space<vmem>>, vector<1x128xf32>
    %c0_5 = arith.constant 0 : index
    %c0_6 = arith.constant 0 : index
    %c0_7 = arith.constant 0 : index
    %3 = vector.load %arg1[%c0_5, %c0_6, %c0_7] : memref<4x64x48xbf16, #tpu.memory_space<vmem>>, vector<1x64x48xbf16>
    %4 = vector.shape_cast %3 : vector<1x64x48xbf16> to vector<64x48xbf16>
    %cst = arith.constant dense<0.000000e+00> : vector<64x128xf32>
    %5 = tpu.matmul %4, %0, %cst {dimension_numbers = #tpu.dot_dimension_numbers<[1], [0], [0], [1], [0, 0, 1, 1], [], []>} : vector<64x48xbf16>, vector<48x128xbf16>, vector<64x128xf32> -> vector<64x128xf32>
    %6 = vector.broadcast %1 : vector<1x128xf32> to vector<64x128xf32>
    %7 = arith.mulf %5, %6 : vector<64x128xf32>
    %8 = vector.broadcast %2 : vector<1x128xf32> to vector<64x128xf32>
    %9 = arith.addf %7, %8 : vector<64x128xf32>
    %cst_8 = arith.constant 0.000000e+00 : f32
    %10 = vector.broadcast %cst_8 : f32 to vector<64x128xf32>
    %11 = arith.maximumf %9, %10 : vector<64x128xf32>
    %c1 = arith.constant 1 : index
    %c0_9 = arith.constant 0 : index
    %c0_10 = arith.constant 0 : index
    %12 = vector.load %arg1[%c1, %c0_9, %c0_10] : memref<4x64x48xbf16, #tpu.memory_space<vmem>>, vector<1x64x48xbf16>
    %13 = vector.shape_cast %12 : vector<1x64x48xbf16> to vector<64x48xbf16>
    %cst_11 = arith.constant dense<0.000000e+00> : vector<64x128xf32>
    %14 = tpu.matmul %13, %0, %cst_11 {dimension_numbers = #tpu.dot_dimension_numbers<[1], [0], [0], [1], [0, 0, 1, 1], [], []>} : vector<64x48xbf16>, vector<48x128xbf16>, vector<64x128xf32> -> vector<64x128xf32>
    %15 = vector.broadcast %1 : vector<1x128xf32> to vector<64x128xf32>
    %16 = arith.mulf %14, %15 : vector<64x128xf32>
    %17 = vector.broadcast %2 : vector<1x128xf32> to vector<64x128xf32>
    %18 = arith.addf %16, %17 : vector<64x128xf32>
    %cst_12 = arith.constant 0.000000e+00 : f32
    %19 = vector.broadcast %cst_12 : f32 to vector<64x128xf32>
    %20 = arith.maximumf %18, %19 : vector<64x128xf32>
    %21 = arith.maximumf %11, %20 : vector<64x128xf32>
    %c2 = arith.constant 2 : index
    %c0_13 = arith.constant 0 : index
    %c0_14 = arith.constant 0 : index
    %22 = vector.load %arg1[%c2, %c0_13, %c0_14] : memref<4x64x48xbf16, #tpu.memory_space<vmem>>, vector<1x64x48xbf16>
    %23 = vector.shape_cast %22 : vector<1x64x48xbf16> to vector<64x48xbf16>
    %cst_15 = arith.constant dense<0.000000e+00> : vector<64x128xf32>
    %24 = tpu.matmul %23, %0, %cst_15 {dimension_numbers = #tpu.dot_dimension_numbers<[1], [0], [0], [1], [0, 0, 1, 1], [], []>} : vector<64x48xbf16>, vector<48x128xbf16>, vector<64x128xf32> -> vector<64x128xf32>
    %25 = vector.broadcast %1 : vector<1x128xf32> to vector<64x128xf32>
    %26 = arith.mulf %24, %25 : vector<64x128xf32>
    %27 = vector.broadcast %2 : vector<1x128xf32> to vector<64x128xf32>
    %28 = arith.addf %26, %27 : vector<64x128xf32>
    %cst_16 = arith.constant 0.000000e+00 : f32
    %29 = vector.broadcast %cst_16 : f32 to vector<64x128xf32>
    %30 = arith.maximumf %28, %29 : vector<64x128xf32>
    %31 = arith.maximumf %21, %30 : vector<64x128xf32>
    %c3 = arith.constant 3 : index
    %c0_17 = arith.constant 0 : index
    %c0_18 = arith.constant 0 : index
    %32 = vector.load %arg1[%c3, %c0_17, %c0_18] : memref<4x64x48xbf16, #tpu.memory_space<vmem>>, vector<1x64x48xbf16>
    %33 = vector.shape_cast %32 : vector<1x64x48xbf16> to vector<64x48xbf16>
    %cst_19 = arith.constant dense<0.000000e+00> : vector<64x128xf32>
    %34 = tpu.matmul %33, %0, %cst_19 {dimension_numbers = #tpu.dot_dimension_numbers<[1], [0], [0], [1], [0, 0, 1, 1], [], []>} : vector<64x48xbf16>, vector<48x128xbf16>, vector<64x128xf32> -> vector<64x128xf32>
    %35 = vector.broadcast %1 : vector<1x128xf32> to vector<64x128xf32>
    %36 = arith.mulf %34, %35 : vector<64x128xf32>
    %37 = vector.broadcast %2 : vector<1x128xf32> to vector<64x128xf32>
    %38 = arith.addf %36, %37 : vector<64x128xf32>
    %cst_20 = arith.constant 0.000000e+00 : f32
    %39 = vector.broadcast %cst_20 : f32 to vector<64x128xf32>
    %40 = arith.maximumf %38, %39 : vector<64x128xf32>
    %41 = arith.maximumf %31, %40 : vector<64x128xf32>
    %c0_21 = arith.constant 0 : index
    %c0_22 = arith.constant 0 : index
    %42 = vector.load %arg5[%c0_21, %c0_22] : memref<64x128xf32, #tpu.memory_space<vmem>>, vector<64x128xf32>
    tpu.vector_store %arg5[%c0_21, %c0_22], %41 {strides = array<i32>} : memref<64x128xf32, #tpu.memory_space<vmem>>, vector<64x128xf32>,
    return
  }
  func.func @transform_0(%arg0: i32) -> (i32, i32, i32) {
    %c0_i32 = arith.constant 0 : i32
    %c0_i32_0 = arith.constant 0 : i32
    %c0_i32_1 = arith.constant 0 : i32
    return %c0_i32, %arg0, %c0_i32_0 : i32, i32, i32
  }
  func.func @transform_1(%arg0: i32) -> (i32, i32) {
    %c0_i32 = arith.constant 0 : i32
    %c0_i32_0 = arith.constant 0 : i32
    %c0_i32_1 = arith.constant 0 : i32
    return %c0_i32, %c0_i32_0 : i32, i32
  }
  func.func @transform_2(%arg0: i32) -> (i32, i32) {
    %c0_i32 = arith.constant 0 : i32
    %c0_i32_0 = arith.constant 0 : i32
    %c0_i32_1 = arith.constant 0 : i32
    return %c0_i32, %c0_i32_0 : i32, i32
  }
  func.func @transform_3(%arg0: i32) -> (i32, i32) {
    %c0_i32 = arith.constant 0 : i32
    %c0_i32_0 = arith.constant 0 : i32
    %c0_i32_1 = arith.constant 0 : i32
    return %c0_i32, %c0_i32_0 : i32, i32
  }
  func.func @transform_4(%arg0: i32) -> (i32, i32) {
    %c0_i32 = arith.constant 0 : i32
    %c0_i32_0 = arith.constant 0 : i32
    return %arg0, %c0_i32 : i32, i32
  }
}

</mosaic_0001>

<bundles_post_ra>
// kernel: downsample_block.3
= control target key start
LH: loop header
LB: loop body
LE: loop exit
PB: predicated region body
PF: predicated region fallthrough
CT: control target
= control target key end

     0   :  { %s1270_s15 = smov 0   ;;  %s1272_s16 = smov 0   ;;  %s1500_s0 = inlined_call_operand.vmem [shape: bf16[4,128,48], index: 0, kind: input, shape index: {}]   ;;  %s1501_s1 = inlined_call_operand.vmem [shape: bf16[48,128], index: 1, kind: input, shape index: {}]   ;;  %s1502_s2 = inlined_call_operand.vmem [shape: f32[1,128], index: 2, kind: input, shape index: {}]   ;;  %s1503_s3 = inlined_call_operand.vmem [shape: f32[1,128], index: 3, kind: input, shape index: {}]   ;;  %s1504_s4 = inlined_call_operand.vmem [shape: f32[128,128], index: 4, kind: output, shape index: {}]  }
   0x1   :  { %s1274_s17 = smov 0  }
   0x2 LB: > { %s1019_s18 = sadd.s32 4294967295, %s1243_s17   ;;  %s1287_s19 = sadd.s32 1, %s1243_s17   ;;  %s1243_s17 = sphi %s1274_s17, %s1507_s17   ;;  %s1239_s16 = sphi %s1272_s16, %s1506_s16   ;;  %s1235_s15 = sphi %s1270_s15, %s1505_s15  }
   0x3   : > { %s18_s20 = ssub.s32 %s1243_s17, %s1287_s19  ;;  %s21_s21 = sadd.s32 1, %s1239_s16 }
   0x4   : > { %p19_p0 = scmp.eq.s32.totalorder %s18_s20, 0  ;;  %p28_p1 = scmp.ne.s32.totalorder %s1239_s16, %s1235_s15 }
   0x5   : > { %p29_p2 = scmp.eq.s32.totalorder %s1243_s17, 0  ;;  %p1022_p4 = scmp.ge.s32.totalorder %s1243_s17, 2 }
   0x6   : > { %s1296_s22 = scalar_select %p19_p0, %s1239_s16, %s21_s21  }
   0x7   : > { %p30_p3 = por %p29_p2, %p28_p1  ;;  %152 = sbr.rel (%p1022_p4) target bundleno = 26 (0x1a), region = 28 }
   0xe   : > { %155 = sbr.rel (!%p30_p3) target bundleno = 26 (0x1a), region = 32  ;;  %s157_s23 = sand.u32 (%p30_p3), 1, %s1239_s16  }
   0xf   : > { %s1093_s24 = sshll.u32 (%p30_p3), %s1243_s17, 5  ;;  %s1023_s25 = sshll.u32 (%p30_p3), %s157_s23, 7 }
  0x10   : > { %s1304_s28 = scalar_lea.vmem (%p30_p3), %s1500_s0, %s1093_s24  ;;  %s159_s29 = scalar_lea.vmem (%p30_p3), [#allocation2], %s1023_s25 }
  0x11   : > { %v178_v0 = vld [vmem:[%s1304_s28] sm:$0xff] (%p30_p3)   ;;  %v182_v1 = vld [vmem:[%s1304_s28 + $0x8] sm:$0xff] (%p30_p3)   ;;  %v186_v2 = vld [vmem:[%s1304_s28 + $0x10] sm:$0xff] (%p30_p3)  }
  0x12   : > { %179 = vst [vmem:[%s159_s29] sm:$0xff] (%p30_p3), %v178_v0   ;;  %183 = vst [vmem:[%s159_s29 + $0x8] sm:$0xff] (%p30_p3), %v182_v1   ;;  %v190_v3 = vld [vmem:[%s1304_s28 + $0x18] sm:$0xff] (%p30_p3)   ;;  %v194_v4 = vld [vmem:[%s1304_s28 + $0x40] sm:$0xff] (%p30_p3)  }
  0x13   : > { %187 = vst [vmem:[%s159_s29 + $0x10] sm:$0xff] (%p30_p3), %v186_v2   ;;  %v198_v5 = vld [vmem:[%s1304_s28 + $0x48] sm:$0xff] (%p30_p3)   ;;  %191 = vst [vmem:[%s159_s29 + $0x18] sm:$0xff] (%p30_p3), %v190_v3   ;;  %v202_v6 = vld [vmem:[%s1304_s28 + $0x50] sm:$0xff] (%p30_p3)  }
  0x14   : > { %195 = vst [vmem:[%s159_s29 + $0x20] sm:$0xff] (%p30_p3), %v194_v4   ;;  %199 = vst [vmem:[%s159_s29 + $0x28] sm:$0xff] (%p30_p3), %v198_v5   ;;  %v206_v7 = vld [vmem:[%s1304_s28 + $0x58] sm:$0xff] (%p30_p3)   ;;  %v210_v8 = vld [vmem:[%s1304_s28 + $0x80] sm:$0xff] (%p30_p3)  }
  0x15   : > { %203 = vst [vmem:[%s159_s29 + $0x30] sm:$0xff] %v202_v6   ;;  %207 = vst [vmem:[%s159_s29 + $0x38] sm:$0xff] %v206_v7   ;;  %v214_v9 = vld [vmem:[%s1304_s28 + $0x88] sm:$0xff]   ;;  %v218_v10 = vld [vmem:[%s1304_s28 + $0x90] sm:$0xff]  }
  0x16   : > { %211 = vst [vmem:[%s159_s29 + $0x40] sm:$0xff] %v210_v8   ;;  %v222_v11 = vld [vmem:[%s1304_s28 + $0x98] sm:$0xff]   ;;  %215 = vst [vmem:[%s159_s29 + $0x48] sm:$0xff] %v214_v9   ;;  %v226_v12 = vld [vmem:[%s1304_s28 + $0xc0] sm:$0xff]  }
  0x17   : > { %219 = vst [vmem:[%s159_s29 + $0x50] sm:$0xff] %v218_v10   ;;  %223 = vst [vmem:[%s159_s29 + $0x58] sm:$0xff] %v222_v11   ;;  %v230_v13 = vld [vmem:[%s1304_s28 + $0xc8] sm:$0xff]   ;;  %v234_v14 = vld [vmem:[%s1304_s28 + $0xd0] sm:$0xff]  }
  0x18   : > { %227 = vst [vmem:[%s159_s29 + $0x60] sm:$0xff] %v226_v12   ;;  %231 = vst [vmem:[%s159_s29 + $0x68] sm:$0xff] %v230_v13   ;;  %v238_v15 = vld [vmem:[%s1304_s28 + $0xd8] sm:$0xff]  }
  0x19   : > { %235 = vst [vmem:[%s159_s29 + $0x70] sm:$0xff] %v234_v14   ;;  %239 = vst [vmem:[%s159_s29 + $0x78] sm:$0xff] %v238_v15  }
  0x1a PF: > { %p1026_p5 = scmp.ge.s32.totalorder %s1243_s17, 1  ;;  %p327_p6 = scmp.lt.s32.totalorder %s1243_s17, 3 }
  0x1c   : > { %p328_p7 = pnand %p1026_p5, %p327_p6 }
  0x1d   : > { %v1202_v16 = vld [vmem:[%s1501_s1] sm:$0xff] (!%p328_p7)   ;;  %s334_s6 = sand.u32 (!%p328_p7), 1, %s1235_s15   ;;  %v1203_v17 = vld [vmem:[%s1501_s1 + $0x8] sm:$0xff] (!%p328_p7)   ;;  %v1204_v18 = vld [vmem:[%s1501_s1 + $0x10] sm:$0xff] (!%p328_p7)   ;;  %vm421_vm0 = vcmask (!%p328_p7), 392192   ;;  %s1408_s21 = sshll.u32 (!%p328_p7), %s1019_s18, 3 }
  0x1e   : > { %331 = sbr.rel (%p328_p7) target bundleno = 293 (0x125), region = 73  ;;  %s1027_s9 = sshll.u32 (!%p328_p7), %s334_s6, 7  ;;  %1122 = vmatprep.subr.bf16.mxu0 (!%p328_p7), %v1202_v16  ;;  %1136 = vmatprep.subr.bf16.mxu1 (!%p328_p7), %v1202_v16  ;;  %v1371_v35 = vld [vmem:[%s1502_s2] ss:$0 sm:$0xff] (!%p328_p7) }
  0x1f   : > { %1123 = vmatpush3.bf16.msra.mxu0 (!%p328_p7), %v1202_v16  ;;  %1137 = vmatpush3.bf16.msra.mxu1 (!%p328_p7), %v1202_v16  ;;  %s1334_s12 = scalar_lea.vmem (!%p328_p7), [#allocation2], %s1027_s9  ;;  %v1376_v36 = vld [vmem:[%s1503_s3] ss:$0 sm:$0xff] (!%p328_p7)  ;;  %p361_p8 = scmp.lt.s32.totalorder (!%p328_p7), %s1408_s21, 15 }
  0x20   : > { %v1205_v19 = vld [vmem:[%s1334_s12] sm:$0xff] (!%p328_p7)   ;;  %1124 = vmatprep.subr.bf16.mxu0 (!%p328_p7), %v1203_v17  ;;  %1138 = vmatprep.subr.bf16.mxu1 (!%p328_p7), %v1203_v17  ;;  %v1207_v21 = vld [vmem:[%s1334_s12 + $0x8] sm:$0xff] (!%p328_p7)   ;;  %v1209_v23 = vld [vmem:[%s1334_s12 + $0x10] sm:$0xff] (!%p328_p7)  }
  0x21   : > { %v1206_v20 = vld [vmem:[%s1334_s12 + $0x20] sm:$0xff] (!%p328_p7)   ;;  %1128 = vmatprep.mubr.msk.bf16.mxu0 (!%p328_p7), %vm421_vm0, %v1205_v19  ;;  %v1208_v22 = vld [vmem:[%s1334_s12 + $0x28] sm:$0xff] (!%p328_p7)   ;;  %v1210_v24 = vld [vmem:[%s1334_s12 + $0x30] sm:$0xff] (!%p328_p7)  }
  0x22   : > { %1142 = vmatprep.mubr.msk.bf16.mxu1 (!%p328_p7), %vm421_vm0, %v1206_v20  ;;  %v1211_v25 = vld [vmem:[%s1334_s12 + $0x18] sm:$0xff] (!%p328_p7)   ;;  %v1213_v27 = vld [vmem:[%s1334_s12 + $0x40] sm:$0xff] (!%p328_p7)   ;;  %v1215_v29 = vld [vmem:[%s1334_s12 + $0x48] sm:$0xff] (!%p328_p7)  }
  0x23   : > { %1125 = vmatpush3.bf16.msra.mxu0 (!%p328_p7), %v1203_v17  ;;  %1139 = vmatpush3.bf16.msra.mxu1 (!%p328_p7), %v1203_v17  ;;  %v1212_v26 = vld [vmem:[%s1334_s12 + $0x38] sm:$0xff] (!%p328_p7)   ;;  %v1214_v28 = vld [vmem:[%s1334_s12 + $0x60] sm:$0xff] (!%p328_p7)   ;;  %v1216_v30 = vld [vmem:[%s1334_s12 + $0x68] sm:$0xff] (!%p328_p7)  }
  0x24   : > { %1126 = vmatprep.subr.bf16.mxu0 (!%p328_p7), %v1204_v18  ;;  %1140 = vmatprep.subr.bf16.mxu1 (!%p328_p7), %v1204_v18  ;;  %v1217_v31 = vld [vmem:[%s1334_s12 + $0x50] sm:$0xff] (!%p328_p7)   ;;  %v1219_v33 = vld [vmem:[%s1334_s12 + $0x58] sm:$0xff] (!%p328_p7)  }
  0x25   : > { %v1218_v32 = vld [vmem:[%s1334_s12 + $0x70] sm:$0xff]   ;;  %v1220_v34 = vld [vmem:[%s1334_s12 + $0x78] sm:$0xff]   ;;  %s1509_s21 = smov (!%p361_p8, %s1408_s21), 15 }
  0x26   : > { %s1029_s17 = sshll.u32 %s1509_s21, 3 }
  0x27   : > { %1127 = vmatpush3.bf16.msra.mxu0 %v1204_v18  ;;  %1141 = vmatpush3.bf16.msra.mxu1 %v1204_v18  ;;  %s1457_s24 = scalar_lea.vmem %s1504_s4, %s1029_s17 }
  0x28   : > { %1150 = vmatprep.subr.bf16.mxu0 %v1202_v16  ;;  %1164 = vmatprep.subr.bf16.mxu1 %v1202_v16 }
  0x2a   : > { %1129 = vmatmul.mubr.msk.bf16.vlgmr.msra.gmra.mrb[0].mxu0 %vm421_vm0, %v1207_v21  ;;  %1143 = vmatmul.mubr.msk.bf16.vlgmr.msra.gmra.mrb[0].mxu1 %vm421_vm0, %v1208_v22 }
  0x2b   : > { %1151 = vmatpush3.bf16.msra.mxu0 %v1202_v16  ;;  %1165 = vmatpush3.bf16.msra.mxu1 %v1202_v16 }
  0x2c   : > { %1152 = vmatprep.subr.bf16.mxu0 %v1203_v17  ;;  %1132 = vmatprep.mubr.msk.bf16.mxu0 %vm421_vm0, %v1209_v23 }
  0x2d   : > { %1146 = vmatprep.mubr.msk.bf16.mxu1 %vm421_vm0, %v1210_v24  ;;  %1166 = vmatprep.subr.bf16.mxu1 %v1203_v17 }
  0x2f   : > { %1153 = vmatpush3.bf16.msra.mxu0 %v1203_v17  ;;  %1167 = vmatpush3.bf16.msra.mxu1 %v1203_v17 }
  0x30   : > { %1154 = vmatprep.subr.bf16.mxu0 %v1204_v18  ;;  %1168 = vmatprep.subr.bf16.mxu1 %v1204_v18 }
  0x32   : > { %1133 = vmatmul.mubr.msk.bf16.gmra.mrb[4].mxu0 %vm421_vm0, %v1211_v25  ;;  %1147 = vmatmul.mubr.msk.bf16.gmra.mrb[4].mxu1 %vm421_vm0, %v1212_v26 }
  0x33   : > { %1155 = vmatpush3.bf16.msra.mxu0 %v1204_v18  ;;  %1169 = vmatpush3.bf16.msra.mxu1 %v1204_v18 }
  0x34   : > { %1156 = vmatprep.mubr.msk.bf16.mxu0 %vm421_vm0, %v1213_v27  ;;  %1170 = vmatprep.mubr.msk.bf16.mxu1 %vm421_vm0, %v1214_v28 }
  0x3a   : > { %1157 = vmatmul.mubr.msk.bf16.vlgmr.msra.gmra.mrb[8].mxu0 %vm421_vm0, %v1215_v29  ;;  %1171 = vmatmul.mubr.msk.bf16.vlgmr.msra.gmra.mrb[8].mxu1 %vm421_vm0, %v1216_v30 }
  0x3b   : > { %1160 = vmatprep.mubr.msk.bf16.mxu0 %vm421_vm0, %v1217_v31  ;;  %1174 = vmatprep.mubr.msk.bf16.mxu1 %vm421_vm0, %v1218_v32 }
  0x42   : > { %1161 = vmatmul.mubr.msk.bf16.gmra.mrb[12].mxu0 %vm421_vm0, %v1219_v33  ;;  %1175 = vmatmul.mubr.msk.bf16.gmra.mrb[12].mxu1 %vm421_vm0, %v1220_v34 }
  0xfd   : > { %v1130_v37 = vpop.f32.mrb[0].mxu0  ;;  %v1144_v38 = vpop.f32.mrb[0].mxu1 }
  0xfe   : > { %v507_v39 = vmul.f32 %v1130_v37, %v1371_v35  ;;  %v643_v40 = vmul.f32 %v1144_v38, %v1371_v35  ;;  %v468_v41 = vpop.f32.mrb[1].mxu0  ;;  %v610_v42 = vpop.f32.mrb[1].mxu1 }
  0xff   : > { %v505_v43 = vmul.f32 %v1371_v35, %v468_v41  ;;  %v641_v44 = vmul.f32 %v1371_v35, %v610_v42  ;;  %v1131_v45 = vpop.f32.mrb[2].mxu0  ;;  %v1145_v46 = vpop.f32.mrb[2].mxu1 }
 0x100   : > { %v521_v47 = vadd.f32 %v1376_v36, %v507_v39  ;;  %v651_v48 = vadd.f32 %v1376_v36, %v643_v40  ;;  %v508_v49 = vmul.f32 %v1131_v45, %v1371_v35  ;;  %v644_v50 = vmul.f32 %v1145_v46, %v1371_v35  ;;  %v471_v51 = vpop.f32.mrb[3].mxu0  ;;  %v613_v52 = vpop.f32.mrb[3].mxu1 }
 0x101   : > { %v519_v53 = vadd.f32 %v1376_v36, %v505_v43  ;;  %v649_v54 = vadd.f32 %v1376_v36, %v641_v44  ;;  %v506_v55 = vmul.f32 %v1371_v35, %v471_v51  ;;  %v642_v56 = vmul.f32 %v1371_v35, %v613_v52 }
 0x102   : > { %v529_v57 = vmax.f32 %v521_v47, 0.0  ;;  %v659_v58 = vmax.f32 %v651_v48, 0.0  ;;  %v522_v59 = vadd.f32 %v1376_v36, %v508_v49  ;;  %v652_v60 = vadd.f32 %v1376_v36, %v644_v50 }
 0x103   : > { %v527_v61 = vmax.f32 %v519_v53, 0.0  ;;  %v657_v62 = vmax.f32 %v649_v54, 0.0  ;;  %v520_v63 = vadd.f32 %v1376_v36, %v506_v55  ;;  %v650_v0 = vadd.f32 %v1376_v36, %v642_v56 }
 0x104   : > { %v1394_v1 = vmax.f32 %v529_v57, %v659_v58  ;;  %v530_v2 = vmax.f32 %v522_v59, 0.0  ;;  %v660_v3 = vmax.f32 %v652_v60, 0.0 }
 0x105   : > { %v1396_v4 = vmax.f32 %v527_v61, %v657_v62  ;;  %v528_v5 = vmax.f32 %v520_v63, 0.0  ;;  %v658_v6 = vmax.f32 %v650_v0, 0.0  ;;  %v1134_v7 = vpop.f32.mrb[4].mxu0  ;;  %v1148_v8 = vpop.f32.mrb[4].mxu1 }
 0x106   : > { %v1398_v9 = vmax.f32 %v530_v2, %v660_v3  ;;  %v511_v10 = vmul.f32 %v1134_v7, %v1371_v35  ;;  %v647_v11 = vmul.f32 %v1148_v8, %v1371_v35  ;;  %v484_v12 = vpop.f32.mrb[5].mxu0  ;;  %v626_v13 = vpop.f32.mrb[5].mxu1 }
 0x107   : > { %v1402_v14 = vmax.f32 %v528_v5, %v658_v6  ;;  %v509_v15 = vmul.f32 %v1371_v35, %v484_v12  ;;  %v645_v16 = vmul.f32 %v1371_v35, %v626_v13  ;;  %v1135_v17 = vpop.f32.mrb[6].mxu0  ;;  %v1149_v18 = vpop.f32.mrb[6].mxu1 }
 0x108   : > { %v525_v19 = vadd.f32 %v1376_v36, %v511_v10  ;;  %v655_v20 = vadd.f32 %v1376_v36, %v647_v11  ;;  %v512_v21 = vmul.f32 %v1135_v17, %v1371_v35  ;;  %v648_v22 = vmul.f32 %v1149_v18, %v1371_v35  ;;  %v487_v23 = vpop.f32.mrb[7].mxu0  ;;  %v629_v24 = vpop.f32.mrb[7].mxu1 }
 0x109   : > { %v523_v25 = vadd.f32 %v1376_v36, %v509_v15  ;;  %v653_v26 = vadd.f32 %v1376_v36, %v645_v16  ;;  %v510_v27 = vmul.f32 %v1371_v35, %v487_v23  ;;  %v646_v28 = vmul.f32 %v1371_v35, %v629_v24 }
 0x10a   : > { %v533_v29 = vmax.f32 %v525_v19, 0.0  ;;  %v663_v30 = vmax.f32 %v655_v20, 0.0  ;;  %v526_v31 = vadd.f32 %v1376_v36, %v512_v21  ;;  %v656_v32 = vadd.f32 %v1376_v36, %v648_v22 }
 0x10b   : > { %v531_v33 = vmax.f32 %v523_v25, 0.0  ;;  %v661_v34 = vmax.f32 %v653_v26, 0.0  ;;  %v524_v37 = vadd.f32 %v1376_v36, %v510_v27  ;;  %v654_v38 = vadd.f32 %v1376_v36, %v646_v28 }
 0x10c   : > { %v1423_v39 = vmax.f32 %v533_v29, %v663_v30  ;;  %v534_v40 = vmax.f32 %v526_v31, 0.0  ;;  %v664_v41 = vmax.f32 %v656_v32, 0.0 }
 0x10d   : > { %v1425_v42 = vmax.f32 %v531_v33, %v661_v34  ;;  %v532_v43 = vmax.f32 %v524_v37, 0.0  ;;  %v662_v44 = vmax.f32 %v654_v38, 0.0  ;;  %v1158_v45 = vpop.f32.mrb[8].mxu0  ;;  %v1172_v46 = vpop.f32.mrb[8].mxu1 }
 0x10e   : > { %v1427_v47 = vmax.f32 %v534_v40, %v664_v41  ;;  %v781_v48 = vmul.f32 %v1158_v45, %v1371_v35  ;;  %v919_v49 = vmul.f32 %v1172_v46, %v1371_v35  ;;  %v748_v50 = vpop.f32.mrb[9].mxu0  ;;  %v886_v51 = vpop.f32.mrb[9].mxu1 }
 0x10f   : > { %v1436_v52 = vmax.f32 %v532_v43, %v662_v44  ;;  %v779_v53 = vmul.f32 %v1371_v35, %v748_v50  ;;  %v917_v54 = vmul.f32 %v1371_v35, %v886_v51  ;;  %v1159_v55 = vpop.f32.mrb[10].mxu0  ;;  %v1173_v56 = vpop.f32.mrb[10].mxu1 }
 0x110   : > { %v789_v57 = vadd.f32 %v1376_v36, %v781_v48  ;;  %v927_v58 = vadd.f32 %v1376_v36, %v919_v49  ;;  %v782_v59 = vmul.f32 %v1159_v55, %v1371_v35  ;;  %v920_v60 = vmul.f32 %v1173_v56, %v1371_v35  ;;  %v751_v61 = vpop.f32.mrb[11].mxu0  ;;  %v889_v62 = vpop.f32.mrb[11].mxu1 }
 0x111   : > { %v787_v63 = vadd.f32 %v1376_v36, %v779_v53  ;;  %v925_v0 = vadd.f32 %v1376_v36, %v917_v54  ;;  %v780_v2 = vmul.f32 %v1371_v35, %v751_v61  ;;  %v918_v3 = vmul.f32 %v1371_v35, %v889_v62 }
 0x112   : > { %v797_v5 = vmax.f32 %v789_v57, 0.0  ;;  %v935_v6 = vmax.f32 %v927_v58, 0.0  ;;  %v790_v7 = vadd.f32 %v1376_v36, %v782_v59  ;;  %v928_v8 = vadd.f32 %v1376_v36, %v920_v60 }
 0x113   : > { %v795_v10 = vmax.f32 %v787_v63, 0.0  ;;  %v933_v11 = vmax.f32 %v925_v0, 0.0  ;;  %v788_v12 = vadd.f32 %v1376_v36, %v780_v2  ;;  %v926_v13 = vadd.f32 %v1376_v36, %v918_v3 }
 0x114   : > { %v805_v15 = vmax.f32 %v1394_v1, %v797_v5  ;;  %v798_v16 = vmax.f32 %v790_v7, 0.0  ;;  %v936_v18 = vmax.f32 %v928_v8, 0.0 }
 0x115   : > { %v803_v17 = vmax.f32 %v1396_v4, %v795_v10  ;;  %v796_v19 = vmax.f32 %v788_v12, 0.0  ;;  %v934_v20 = vmax.f32 %v926_v13, 0.0  ;;  %v1162_v21 = vpop.f32.mrb[12].mxu0  ;;  %v1176_v22 = vpop.f32.mrb[12].mxu1 }
 0x116   : > { %v943_v23 = vmax.f32 %v805_v15, %v935_v6  ;;  %v806_v24 = vmax.f32 %v1398_v9, %v798_v16  ;;  %v785_v25 = vmul.f32 %v1162_v21, %v1371_v35  ;;  %v923_v1 = vmul.f32 %v1176_v22, %v1371_v35  ;;  %v764_v26 = vpop.f32.mrb[13].mxu0  ;;  %v902_v27 = vpop.f32.mrb[13].mxu1 }
 0x117   : > { %v941_v28 = vmax.f32 %v803_v17, %v933_v11  ;;  %v804_v29 = vmax.f32 %v1402_v14, %v796_v19  ;;  %v783_v4 = vmul.f32 %v1371_v35, %v764_v26  ;;  %v921_v30 = vmul.f32 %v1371_v35, %v902_v27  ;;  %v1163_v31 = vpop.f32.mrb[14].mxu0  ;;  %v1177_v32 = vpop.f32.mrb[14].mxu1 }
 0x118   : > { %951 = vst [vmem:[%s1457_s24 + $0x10] sm:$0xff] %v943_v23  ;;  %v944_v33 = vmax.f32 %v806_v24, %v936_v18  ;;  %v793_v9 = vadd.f32 %v1376_v36, %v785_v25  ;;  %v931_v34 = vadd.f32 %v1376_v36, %v923_v1  ;;  %v786_v37 = vmul.f32 %v1163_v31, %v1371_v35  ;;  %v767_v38 = vpop.f32.mrb[15].mxu0  ;;  %v905_v40 = vpop.f32.mrb[15].mxu1 }
 0x119   : > { %949 = vst [vmem:[%s1457_s24] sm:$0xff] %v941_v28  ;;  %v942_v14 = vmax.f32 %v804_v29, %v934_v20  ;;  %v791_v41 = vadd.f32 %v1376_v36, %v783_v4  ;;  %v929_v43 = vadd.f32 %v1376_v36, %v921_v30  ;;  %v924_v44 = vmul.f32 %v1177_v32, %v1371_v35 }
 0x11a   : > { %952 = vst [vmem:[%s1457_s24 + $0x18] sm:$0xff] %v944_v33  ;;  %v801_v45 = vmax.f32 %v793_v9, 0.0  ;;  %v939_v46 = vmax.f32 %v931_v34, 0.0  ;;  %v794_v48 = vadd.f32 %v1376_v36, %v786_v37  ;;  %v784_v49 = vmul.f32 %v1371_v35, %v767_v38 }
 0x11b   : > { %950 = vst [vmem:[%s1457_s24 + $0x8] sm:$0xff] %v942_v14  ;;  %v799_v50 = vmax.f32 %v791_v41, 0.0  ;;  %v937_v51 = vmax.f32 %v929_v43, 0.0  ;;  %v932_v53 = vadd.f32 %v1376_v36, %v924_v44  ;;  %v922_v54 = vmul.f32 %v1371_v35, %v905_v40 }
 0x11c   : > { %v809_v55 = vmax.f32 %v1423_v39, %v801_v45  ;;  %v802_v56 = vmax.f32 %v794_v48, 0.0  ;;  %v792_v57 = vadd.f32 %v1376_v36, %v784_v49 }
 0x11d   : > { %v807_v58 = vmax.f32 %v1425_v42, %v799_v50  ;;  %v930_v59 = vadd.f32 %v1376_v36, %v922_v54  ;;  %v940_v62 = vmax.f32 %v932_v53, 0.0 }
 0x11e   : > { %v947_v60 = vmax.f32 %v809_v55, %v939_v46  ;;  %v810_v61 = vmax.f32 %v1427_v47, %v802_v56  ;;  %v800_v63 = vmax.f32 %v792_v57, 0.0 }
 0x11f   : > { %v945_v0 = vmax.f32 %v807_v58, %v937_v51  ;;  %v938_v3 = vmax.f32 %v930_v59, 0.0 }
 0x120   : > { %955 = vst [vmem:[%s1457_s24 + $0x30] sm:$0xff] %v947_v60  ;;  %v948_v2 = vmax.f32 %v810_v61, %v940_v62  ;;  %v808_v35 = vmax.f32 %v1436_v52, %v800_v63 }
 0x121   : > { %953 = vst [vmem:[%s1457_s24 + $0x20] sm:$0xff] %v945_v0 }
 0x122   : > { %956 = vst [vmem:[%s1457_s24 + $0x38] sm:$0xff] %v948_v2  ;;  %v946_v39 = vmax.f32 %v808_v35, %v938_v3 }
 0x124   : > { %954 = vst [vmem:[%s1457_s24 + $0x28] sm:$0xff] %v946_v39 }
 0x125 PF: > { %p11_p9 = scmp.ge.s32.totalorder %s1287_s19, 4   ;;  %s1505_s15 = smov %s1239_s16 }
 0x126   : > { %s1506_s16 = smov %s1296_s22  ;;  %s1507_s17 = smov %s1287_s19 }
 0x127   :  { %13 = sbr.rel (!%p11_p9) target bundleno = 2 (0x2), region = 115 }

// kernel: downsample_block.2
= control target key start
LH: loop header
LB: loop body
LE: loop exit
PB: predicated region body
PF: predicated region fallthrough
CT: control target
= control target key end

     0   :  { %s1258_s12 = smov 0   ;;  %s1260_s13 = smov 0   ;;  %s1376_s0 = inlined_call_operand.vmem [shape: bf16[4,128,48], index: 0, kind: input, shape index: {}]   ;;  %s1377_s1 = inlined_call_operand.vmem [shape: bf16[48,128], index: 1, kind: input, shape index: {}]   ;;  %s1378_s2 = inlined_call_operand.vmem [shape: f32[2,1,128], index: 2, kind: output, shape index: {0}]   ;;  %s1379_s3 = inlined_call_operand.vmem [shape: f32[2,1,128], index: 3, kind: output, shape index: {1}]  }
   0x1   :  { %s1262_s14 = smov 0  }
   0x2 LB: > { %s1016_s15 = sadd.s32 4294967295, %s1236_s14   ;;  %s1275_s16 = sadd.s32 1, %s1236_s14   ;;  %s1236_s14 = sphi %s1262_s14, %s1382_s14   ;;  %s1232_s13 = sphi %s1260_s13, %s1381_s13   ;;  %s1228_s12 = sphi %s1258_s12, %s1380_s12  }
   0x3   : > { %s18_s17 = ssub.s32 %s1236_s14, %s1275_s16  ;;  %s21_s18 = sadd.s32 1, %s1232_s13 }
   0x4   : > { %p19_p0 = scmp.eq.s32.totalorder %s18_s17, 0  ;;  %p28_p1 = scmp.ne.s32.totalorder %s1232_s13, %s1228_s12 }
   0x5   : > { %p29_p2 = scmp.eq.s32.totalorder %s1236_s14, 0  ;;  %p1019_p4 = scmp.ge.s32.totalorder %s1236_s14, 2 }
   0x6   : > { %s1284_s19 = scalar_select %p19_p0, %s1232_s13, %s21_s18  }
   0x7   : > { %p30_p3 = por %p29_p2, %p28_p1  ;;  %130 = sbr.rel (%p1019_p4) target bundleno = 26 (0x1a), region = 20 }
   0xe   : > { %133 = sbr.rel (!%p30_p3) target bundleno = 26 (0x1a), region = 24  ;;  %s135_s20 = sand.u32 (%p30_p3), 1, %s1232_s13  }
   0xf   : > { %s1086_s21 = sshll.u32 (%p30_p3), %s1236_s14, 5  ;;  %s1020_s22 = sshll.u32 (%p30_p3), %s135_s20, 7 }
  0x10   : > { %s1292_s25 = scalar_lea.vmem (%p30_p3), %s1376_s0, %s1086_s21  ;;  %s137_s26 = scalar_lea.vmem (%p30_p3), [#allocation2], %s1020_s22 }
  0x11   : > { %v156_v0 = vld [vmem:[%s1292_s25] sm:$0xff] (%p30_p3)   ;;  %v160_v1 = vld [vmem:[%s1292_s25 + $0x8] sm:$0xff] (%p30_p3)   ;;  %v164_v2 = vld [vmem:[%s1292_s25 + $0x10] sm:$0xff] (%p30_p3)  }
  0x12   : > { %157 = vst [vmem:[%s137_s26] sm:$0xff] (%p30_p3), %v156_v0   ;;  %161 = vst [vmem:[%s137_s26 + $0x8] sm:$0xff] (%p30_p3), %v160_v1   ;;  %v168_v3 = vld [vmem:[%s1292_s25 + $0x18] sm:$0xff] (%p30_p3)   ;;  %v172_v4 = vld [vmem:[%s1292_s25 + $0x40] sm:$0xff] (%p30_p3)  }
  0x13   : > { %165 = vst [vmem:[%s137_s26 + $0x10] sm:$0xff] (%p30_p3), %v164_v2   ;;  %v176_v5 = vld [vmem:[%s1292_s25 + $0x48] sm:$0xff] (%p30_p3)   ;;  %169 = vst [vmem:[%s137_s26 + $0x18] sm:$0xff] (%p30_p3), %v168_v3   ;;  %v180_v6 = vld [vmem:[%s1292_s25 + $0x50] sm:$0xff] (%p30_p3)  }
  0x14   : > { %173 = vst [vmem:[%s137_s26 + $0x20] sm:$0xff] (%p30_p3), %v172_v4   ;;  %177 = vst [vmem:[%s137_s26 + $0x28] sm:$0xff] (%p30_p3), %v176_v5   ;;  %v184_v7 = vld [vmem:[%s1292_s25 + $0x58] sm:$0xff] (%p30_p3)   ;;  %v188_v8 = vld [vmem:[%s1292_s25 + $0x80] sm:$0xff] (%p30_p3)  }
  0x15   : > { %181 = vst [vmem:[%s137_s26 + $0x30] sm:$0xff] %v180_v6   ;;  %185 = vst [vmem:[%s137_s26 + $0x38] sm:$0xff] %v184_v7   ;;  %v192_v9 = vld [vmem:[%s1292_s25 + $0x88] sm:$0xff]   ;;  %v196_v10 = vld [vmem:[%s1292_s25 + $0x90] sm:$0xff]  }
  0x16   : > { %189 = vst [vmem:[%s137_s26 + $0x40] sm:$0xff] %v188_v8   ;;  %v200_v11 = vld [vmem:[%s1292_s25 + $0x98] sm:$0xff]   ;;  %193 = vst [vmem:[%s137_s26 + $0x48] sm:$0xff] %v192_v9   ;;  %v204_v12 = vld [vmem:[%s1292_s25 + $0xc0] sm:$0xff]  }
  0x17   : > { %197 = vst [vmem:[%s137_s26 + $0x50] sm:$0xff] %v196_v10   ;;  %201 = vst [vmem:[%s137_s26 + $0x58] sm:$0xff] %v200_v11   ;;  %v208_v13 = vld [vmem:[%s1292_s25 + $0xc8] sm:$0xff]   ;;  %v212_v14 = vld [vmem:[%s1292_s25 + $0xd0] sm:$0xff]  }
  0x18   : > { %205 = vst [vmem:[%s137_s26 + $0x60] sm:$0xff] %v204_v12   ;;  %209 = vst [vmem:[%s137_s26 + $0x68] sm:$0xff] %v208_v13   ;;  %v216_v15 = vld [vmem:[%s1292_s25 + $0xd8] sm:$0xff]  }
  0x19   : > { %213 = vst [vmem:[%s137_s26 + $0x70] sm:$0xff] %v212_v14   ;;  %217 = vst [vmem:[%s137_s26 + $0x78] sm:$0xff] %v216_v15  }
  0x1a PF: > { %p1023_p5 = scmp.ge.s32.totalorder %s1236_s14, 1  ;;  %p305_p6 = scmp.lt.s32.totalorder %s1236_s14, 3 }
  0x1c   : > { %p306_p7 = pnand %p1023_p5, %p305_p6 }
  0x1d   : > { %v1195_v16 = vld [vmem:[%s1377_s1] sm:$0xff] (!%p306_p7)   ;;  %s312_s29 = sand.u32 (!%p306_p7), 1, %s1228_s12   ;;  %v1196_v17 = vld [vmem:[%s1377_s1 + $0x8] sm:$0xff] (!%p306_p7)   ;;  %v1197_v18 = vld [vmem:[%s1377_s1 + $0x10] sm:$0xff] (!%p306_p7)   ;;  %vm396_vm0 = vcmask (!%p306_p7), 392192   ;;  %p337_p8 = scmp.lt.s32.totalorder (!%p306_p7), %s1016_s15, 1 }
  0x1e   : > { %309 = sbr.rel (%p306_p7) target bundleno = 308 (0x134), region = 65  ;;  %s1024_s5 = sshll.u32 (!%p306_p7), %s312_s29, 7  ;;  %1115 = vmatprep.subr.bf16.mxu0 (!%p306_p7), %v1195_v16  ;;  %1129 = vmatprep.subr.bf16.mxu1 (!%p306_p7), %v1195_v16 }
  0x1f   : > { %1116 = vmatpush3.bf16.msra.mxu0 (!%p306_p7), %v1195_v16  ;;  %1130 = vmatpush3.bf16.msra.mxu1 (!%p306_p7), %v1195_v16  ;;  %s1322_s8 = scalar_lea.vmem (!%p306_p7), [#allocation2], %s1024_s5 }
  0x20   : > { %v1198_v19 = vld [vmem:[%s1322_s8] sm:$0xff] (!%p306_p7)   ;;  %1117 = vmatprep.subr.bf16.mxu0 (!%p306_p7), %v1196_v17  ;;  %1131 = vmatprep.subr.bf16.mxu1 (!%p306_p7), %v1196_v17  ;;  %v1200_v21 = vld [vmem:[%s1322_s8 + $0x8] sm:$0xff] (!%p306_p7)   ;;  %v1202_v23 = vld [vmem:[%s1322_s8 + $0x10] sm:$0xff] (!%p306_p7)  }
  0x21   : > { %v1199_v20 = vld [vmem:[%s1322_s8 + $0x20] sm:$0xff] (!%p306_p7)   ;;  %1121 = vmatprep.mubr.msk.bf16.mxu0 (!%p306_p7), %vm396_vm0, %v1198_v19  ;;  %v1201_v22 = vld [vmem:[%s1322_s8 + $0x28] sm:$0xff] (!%p306_p7)   ;;  %v1203_v24 = vld [vmem:[%s1322_s8 + $0x30] sm:$0xff] (!%p306_p7)  }
  0x22   : > { %1135 = vmatprep.mubr.msk.bf16.mxu1 (!%p306_p7), %vm396_vm0, %v1199_v20  ;;  %v1204_v25 = vld [vmem:[%s1322_s8 + $0x18] sm:$0xff] (!%p306_p7)   ;;  %v1206_v27 = vld [vmem:[%s1322_s8 + $0x40] sm:$0xff] (!%p306_p7)   ;;  %v1208_v29 = vld [vmem:[%s1322_s8 + $0x48] sm:$0xff] (!%p306_p7)  }
  0x23   : > { %1118 = vmatpush3.bf16.msra.mxu0 (!%p306_p7), %v1196_v17  ;;  %1132 = vmatpush3.bf16.msra.mxu1 (!%p306_p7), %v1196_v17  ;;  %v1205_v26 = vld [vmem:[%s1322_s8 + $0x38] sm:$0xff] (!%p306_p7)   ;;  %v1207_v28 = vld [vmem:[%s1322_s8 + $0x60] sm:$0xff] (!%p306_p7)   ;;  %v1209_v30 = vld [vmem:[%s1322_s8 + $0x68] sm:$0xff] (!%p306_p7)  }
  0x24   : > { %1119 = vmatprep.subr.bf16.mxu0 (!%p306_p7), %v1197_v18  ;;  %1133 = vmatprep.subr.bf16.mxu1 (!%p306_p7), %v1197_v18  ;;  %v1210_v31 = vld [vmem:[%s1322_s8 + $0x50] sm:$0xff] (!%p306_p7)   ;;  %v1212_v33 = vld [vmem:[%s1322_s8 + $0x58] sm:$0xff] (!%p306_p7)  }
  0x25   : > { %v1211_v32 = vld [vmem:[%s1322_s8 + $0x70] sm:$0xff]   ;;  %v1213_v34 = vld [vmem:[%s1322_s8 + $0x78] sm:$0xff]   ;;  %s1384_s15 = smov (!%p337_p8, %s1016_s15), 1 }
  0x26   : > { %s339_s11 = scalar_lea.vmem %s1378_s2, %s1384_s15  ;;  %s342_s14 = scalar_lea.vmem %s1379_s3, %s1384_s15 }
  0x27   : > { %1120 = vmatpush3.bf16.msra.mxu0 %v1197_v18  ;;  %1134 = vmatpush3.bf16.msra.mxu1 %v1197_v18 }
  0x28   : > { %1143 = vmatprep.subr.bf16.mxu0 %v1195_v16  ;;  %1157 = vmatprep.subr.bf16.mxu1 %v1195_v16 }
  0x2a   : > { %1122 = vmatmul.mubr.msk.bf16.vlgmr.msra.gmra.mrb[0].mxu0 %vm396_vm0, %v1200_v21  ;;  %1136 = vmatmul.mubr.msk.bf16.vlgmr.msra.gmra.mrb[0].mxu1 %vm396_vm0, %v1201_v22 }
  0x2b   : > { %1144 = vmatpush3.bf16.msra.mxu0 %v1195_v16  ;;  %1158 = vmatpush3.bf16.msra.mxu1 %v1195_v16 }
  0x2c   : > { %1145 = vmatprep.subr.bf16.mxu0 %v1196_v17  ;;  %1125 = vmatprep.mubr.msk.bf16.mxu0 %vm396_vm0, %v1202_v23 }
  0x2d   : > { %1139 = vmatprep.mubr.msk.bf16.mxu1 %vm396_vm0, %v1203_v24  ;;  %1159 = vmatprep.subr.bf16.mxu1 %v1196_v17 }
  0x2f   : > { %1146 = vmatpush3.bf16.msra.mxu0 %v1196_v17  ;;  %1160 = vmatpush3.bf16.msra.mxu1 %v1196_v17 }
  0x30   : > { %1147 = vmatprep.subr.bf16.mxu0 %v1197_v18  ;;  %1161 = vmatprep.subr.bf16.mxu1 %v1197_v18 }
  0x32   : > { %1126 = vmatmul.mubr.msk.bf16.gmra.mrb[4].mxu0 %vm396_vm0, %v1204_v25  ;;  %1140 = vmatmul.mubr.msk.bf16.gmra.mrb[4].mxu1 %vm396_vm0, %v1205_v26 }
  0x33   : > { %1148 = vmatpush3.bf16.msra.mxu0 %v1197_v18  ;;  %1162 = vmatpush3.bf16.msra.mxu1 %v1197_v18 }
  0x34   : > { %1149 = vmatprep.mubr.msk.bf16.mxu0 %vm396_vm0, %v1206_v27  ;;  %1163 = vmatprep.mubr.msk.bf16.mxu1 %vm396_vm0, %v1207_v28 }
  0x3a   : > { %1150 = vmatmul.mubr.msk.bf16.vlgmr.msra.gmra.mrb[8].mxu0 %vm396_vm0, %v1208_v29  ;;  %1164 = vmatmul.mubr.msk.bf16.vlgmr.msra.gmra.mrb[8].mxu1 %vm396_vm0, %v1209_v30 }
  0x3b   : > { %1153 = vmatprep.mubr.msk.bf16.mxu0 %vm396_vm0, %v1210_v31  ;;  %1167 = vmatprep.mubr.msk.bf16.mxu1 %vm396_vm0, %v1211_v32 }
  0x42   : > { %1154 = vmatmul.mubr.msk.bf16.gmra.mrb[12].mxu0 %vm396_vm0, %v1212_v33  ;;  %1168 = vmatmul.mubr.msk.bf16.gmra.mrb[12].mxu1 %vm396_vm0, %v1213_v34 }
  0xfd   : > { %v1123_v35 = vpop.f32.mrb[0].mxu0  ;;  %v1137_v36 = vpop.f32.mrb[0].mxu1 }
  0xfe   : > { %v443_v37 = vpop.f32.mrb[1].mxu0  ;;  %v585_v38 = vpop.f32.mrb[1].mxu1  ;;  %v490_v49 = vmul.f32 %v1123_v35, %v1123_v35  ;;  %v632_v50 = vmul.f32 %v1137_v36, %v1137_v36 }
  0xff   : > { %v630_v39 = vmul.f32 %v585_v38, %v585_v38  ;;  %v1124_v40 = vpop.f32.mrb[2].mxu0  ;;  %v1138_v41 = vpop.f32.mrb[2].mxu1  ;;  %v488_v42 = vmul.f32 %v443_v37, %v443_v37 }
 0x100   : > { %v446_v43 = vpop.f32.mrb[3].mxu0  ;;  %v588_v44 = vpop.f32.mrb[3].mxu1  ;;  %v491_v55 = vmul.f32 %v1124_v40, %v1124_v40  ;;  %v633_v62 = vmul.f32 %v1138_v41, %v1138_v41 }
 0x101   : > { %v474_v45 = vadd.f32 %v446_v43, %v443_v37  ;;  %v489_v46 = vmul.f32 %v446_v43, %v446_v43  ;;  %v616_v47 = vadd.f32 %v588_v44, %v585_v38  ;;  %v631_v48 = vmul.f32 %v588_v44, %v588_v44 }
 0x103   : > { %v475_v51 = vadd.f32 %v1123_v35, %v474_v45  ;;  %v496_v52 = vadd.f32 %v489_v46, %v488_v42  ;;  %v617_v53 = vadd.f32 %v1137_v36, %v616_v47  ;;  %v638_v54 = vadd.f32 %v631_v48, %v630_v39 }
 0x105   : > { %v497_v56 = vadd.f32 %v496_v52, %v490_v49  ;;  %v639_v57 = vadd.f32 %v638_v54, %v632_v50  ;;  %v1127_v58 = vpop.f32.mrb[4].mxu0  ;;  %v1141_v59 = vpop.f32.mrb[4].mxu1  ;;  %v476_v60 = vadd.f32 %v1124_v40, %v475_v51  ;;  %v618_v61 = vadd.f32 %v1138_v41, %v617_v53 }
 0x106   : > { %v459_v63 = vpop.f32.mrb[5].mxu0  ;;  %v601_v0 = vpop.f32.mrb[5].mxu1  ;;  %v494_v17 = vmul.f32 %v1127_v58, %v1127_v58  ;;  %v636_v21 = vmul.f32 %v1141_v59, %v1141_v59 }
 0x107   : > { %v477_v1 = vadd.f32 %v476_v60, %v459_v63  ;;  %v492_v2 = vmul.f32 %v459_v63, %v459_v63  ;;  %v498_v3 = vadd.f32 %v497_v56, %v491_v55  ;;  %v619_v4 = vadd.f32 %v618_v61, %v601_v0  ;;  %v1128_v5 = vpop.f32.mrb[6].mxu0  ;;  %v1142_v6 = vpop.f32.mrb[6].mxu1 }
 0x108   : > { %v634_v7 = vmul.f32 %v601_v0, %v601_v0  ;;  %v640_v8 = vadd.f32 %v639_v57, %v633_v62  ;;  %v462_v9 = vpop.f32.mrb[7].mxu0  ;;  %v604_v10 = vpop.f32.mrb[7].mxu1  ;;  %v495_v23 = vmul.f32 %v1128_v5, %v1128_v5  ;;  %v637_v29 = vmul.f32 %v1142_v6, %v1142_v6 }
 0x109   : > { %v499_v11 = vadd.f32 %v498_v3, %v492_v2  ;;  %v478_v12 = vadd.f32 %v477_v1, %v462_v9  ;;  %v493_v13 = vmul.f32 %v462_v9, %v462_v9  ;;  %v620_v14 = vadd.f32 %v619_v4, %v604_v10 }
 0x10a   : > { %v641_v15 = vadd.f32 %v640_v8, %v634_v7  ;;  %v635_v16 = vmul.f32 %v604_v10, %v604_v10 }
 0x10b   : > { %v479_v18 = vadd.f32 %v1127_v58, %v478_v12  ;;  %v500_v19 = vadd.f32 %v499_v11, %v493_v13  ;;  %v621_v20 = vadd.f32 %v1141_v59, %v620_v14 }
 0x10c   : > { %v642_v22 = vadd.f32 %v641_v15, %v635_v16 }
 0x10d   : > { %v480_v24 = vadd.f32 %v1128_v5, %v479_v18  ;;  %v501_v25 = vadd.f32 %v500_v19, %v494_v17  ;;  %v622_v26 = vadd.f32 %v1142_v6, %v621_v20  ;;  %v1151_v27 = vpop.f32.mrb[8].mxu0  ;;  %v1165_v28 = vpop.f32.mrb[8].mxu1 }
 0x10e   : > { %v643_v30 = vadd.f32 %v642_v22, %v636_v21  ;;  %v727_v31 = vpop.f32.mrb[9].mxu0  ;;  %v869_v32 = vpop.f32.mrb[9].mxu1  ;;  %v774_v36 = vmul.f32 %v1151_v27, %v1151_v27  ;;  %v916_v40 = vmul.f32 %v1165_v28, %v1165_v28 }
 0x10f   : > { %v481_v33 = vrot.slane %v480_v24, 4  ;;  %v502_v34 = vadd.f32 %v501_v25, %v495_v23  ;;  %v623_v35 = vrot.slane %v622_v26, 4  ;;  %v1152_v37 = vpop.f32.mrb[10].mxu0  ;;  %v1166_v38 = vpop.f32.mrb[10].mxu1  ;;  %v772_v41 = vmul.f32 %v727_v31, %v727_v31 }
 0x110   : > { %v644_v39 = vadd.f32 %v643_v30, %v637_v29  ;;  %v914_v42 = vmul.f32 %v869_v32, %v869_v32  ;;  %v730_v43 = vpop.f32.mrb[11].mxu0  ;;  %v872_v44 = vpop.f32.mrb[11].mxu1  ;;  %v775_v4 = vmul.f32 %v1152_v37, %v1152_v37  ;;  %v917_v12 = vmul.f32 %v1166_v38, %v1166_v38 }
 0x111   : > { %v482_v45 = vadd.f32 %v481_v33, %v480_v24  ;;  %v503_v46 = vrot.slane %v502_v34, 4  ;;  %v624_v47 = vadd.f32 %v623_v35, %v622_v26  ;;  %v758_v48 = vadd.f32 %v730_v43, %v727_v31 }
 0x112   : > { %v645_v49 = vrot.slane %v644_v39, 4  ;;  %v773_v50 = vmul.f32 %v730_v43, %v730_v43  ;;  %v900_v51 = vadd.f32 %v872_v44, %v869_v32  ;;  %v915_v52 = vmul.f32 %v872_v44, %v872_v44 }
 0x113   : > { %v483_v53 = vrot.slane %v482_v45, 2  ;;  %v504_v54 = vadd.f32 %v503_v46, %v502_v34  ;;  %v625_v55 = vrot.slane %v624_v47, 2  ;;  %v759_v56 = vadd.f32 %v1151_v27, %v758_v48 }
 0x114   : > { %v646_v57 = vadd.f32 %v645_v49, %v644_v39  ;;  %v780_v58 = vadd.f32 %v773_v50, %v772_v41  ;;  %v901_v59 = vadd.f32 %v1165_v28, %v900_v51  ;;  %v922_v60 = vadd.f32 %v915_v52, %v914_v42 }
 0x115   : > { %v484_v61 = vadd.f32 %v483_v53, %v482_v45  ;;  %v505_v62 = vrot.slane %v504_v54, 2  ;;  %v626_v63 = vadd.f32 %v625_v55, %v624_v47  ;;  %v1155_v0 = vpop.f32.mrb[12].mxu0  ;;  %v1169_v1 = vpop.f32.mrb[12].mxu1  ;;  %v760_v2 = vadd.f32 %v1152_v37, %v759_v56 }
 0x116   : > { %v647_v3 = vrot.slane %v646_v57, 2  ;;  %v781_v5 = vadd.f32 %v780_v58, %v774_v36  ;;  %v923_v6 = vadd.f32 %v922_v60, %v916_v40  ;;  %v743_v7 = vpop.f32.mrb[13].mxu0  ;;  %v885_v8 = vpop.f32.mrb[13].mxu1  ;;  %v902_v24 = vadd.f32 %v1166_v38, %v901_v59 }
 0x117   : > { %v485_v9 = vrot.slane %v484_v61, 1  ;;  %v506_v10 = vadd.f32 %v505_v62, %v504_v54  ;;  %v627_v11 = vrot.slane %v626_v63, 1  ;;  %v1156_v13 = vpop.f32.mrb[14].mxu0  ;;  %v1170_v14 = vpop.f32.mrb[14].mxu1  ;;  %v761_v16 = vadd.f32 %v760_v2, %v743_v7 }
 0x118   : > { %v648_v15 = vadd.f32 %v647_v3, %v646_v57  ;;  %v776_v17 = vmul.f32 %v743_v7, %v743_v7  ;;  %v782_v18 = vadd.f32 %v781_v5, %v775_v4  ;;  %v746_v19 = vpop.f32.mrb[15].mxu0  ;;  %v888_v20 = vpop.f32.mrb[15].mxu1  ;;  %v918_v27 = vmul.f32 %v885_v8, %v885_v8 }
 0x119   : > { %v486_v21 = vadd.f32 %v485_v9, %v484_v61  ;;  %v507_v22 = vrot.slane %v506_v10, 1  ;;  %v628_v23 = vadd.f32 %v627_v11, %v626_v63  ;;  %v924_v28 = vadd.f32 %v923_v6, %v917_v12 }
 0x11a   : > { %v649_v25 = vrot.slane %v648_v15, 1  ;;  %v783_v26 = vadd.f32 %v782_v18, %v776_v17  ;;  %v903_v31 = vadd.f32 %v902_v24, %v885_v8  ;;  %v762_v34 = vadd.f32 %v761_v16, %v746_v19 }
 0x11b   : > { %v508_v29 = vadd.f32 %v507_v22, %v506_v10  ;;  %v629_v30 = vadd.f32 %v628_v23, %v486_v21  ;;  %v925_v33 = vadd.f32 %v924_v28, %v918_v27  ;;  %v777_v35 = vmul.f32 %v746_v19, %v746_v19 }
 0x11c   : > { %v650_v32 = vadd.f32 %v649_v25, %v648_v15  ;;  %v904_v36 = vadd.f32 %v903_v31, %v888_v20  ;;  %v919_v37 = vmul.f32 %v888_v20, %v888_v20  ;;  %v778_v40 = vmul.f32 %v1155_v0, %v1155_v0 }
 0x11d   : > { %v763_v41 = vadd.f32 %v1155_v0, %v762_v34  ;;  %v920_v42 = vmul.f32 %v1169_v1, %v1169_v1  ;;  %v784_v43 = vadd.f32 %v783_v26, %v777_v35  ;;  %v779_v45 = vmul.f32 %v1156_v13, %v1156_v13 }
 0x11e   : > { %v651_v39 = vadd.f32 %v650_v32, %v508_v29  ;;  %v905_v44 = vadd.f32 %v1169_v1, %v904_v36  ;;  %v926_v38 = vadd.f32 %v925_v33, %v919_v37  ;;  %v921_v47 = vmul.f32 %v1170_v14, %v1170_v14 }
 0x11f   : > { %v764_v46 = vadd.f32 %v1156_v13, %v763_v41  ;;  %v785_v48 = vadd.f32 %v784_v43, %v778_v40 }
 0x120   : > { %v906_v49 = vadd.f32 %v1170_v14, %v905_v44  ;;  %v927_v50 = vadd.f32 %v926_v38, %v920_v42 }
 0x121   : > { %v765_v51 = vrot.slane %v764_v46, 4  ;;  %v786_v52 = vadd.f32 %v785_v48, %v779_v45 }
 0x122   : > { %v907_v53 = vrot.slane %v906_v49, 4  ;;  %v928_v54 = vadd.f32 %v927_v50, %v921_v47 }
 0x123   : > { %v766_v55 = vadd.f32 %v765_v51, %v764_v46  ;;  %v787_v56 = vrot.slane %v786_v52, 4 }
 0x124   : > { %v908_v57 = vadd.f32 %v907_v53, %v906_v49  ;;  %v929_v58 = vrot.slane %v928_v54, 4 }
 0x125   : > { %v767_v59 = vrot.slane %v766_v55, 2  ;;  %v788_v60 = vadd.f32 %v787_v56, %v786_v52 }
 0x126   : > { %v909_v61 = vrot.slane %v908_v57, 2  ;;  %v930_v62 = vadd.f32 %v929_v58, %v928_v54 }
 0x127   : > { %v768_v63 = vadd.f32 %v767_v59, %v766_v55  ;;  %v789_v0 = vrot.slane %v788_v60, 2 }
 0x128   : > { %v910_v1 = vadd.f32 %v909_v61, %v908_v57  ;;  %v931_v2 = vrot.slane %v930_v62, 2 }
 0x129   : > { %v769_v3 = vrot.slane %v768_v63, 1  ;;  %v790_v4 = vadd.f32 %v789_v0, %v788_v60 }
 0x12a   : > { %v911_v5 = vrot.slane %v910_v1, 1  ;;  %v932_v6 = vadd.f32 %v931_v2, %v930_v62 }
 0x12b   : > { %v770_v7 = vadd.f32 %v769_v3, %v768_v63  ;;  %v791_v8 = vrot.slane %v790_v4, 1 }
 0x12c   : > { %v933_v9 = vrot.slane %v932_v6, 1  ;;  %v912_v11 = vadd.f32 %v911_v5, %v910_v1 }
 0x12d   : > { %v771_v10 = vadd.f32 %v770_v7, %v629_v30  ;;  %v792_v12 = vadd.f32 %v791_v8, %v790_v4 }
 0x12e   : > { %v934_v15 = vadd.f32 %v933_v9, %v932_v6 }
 0x12f   : > { %v913_v13 = vadd.f32 %v912_v11, %v771_v10  ;;  %v793_v14 = vadd.f32 %v792_v12, %v651_v39 }
 0x131   : > { %936 = vst [vmem:[%s339_s11] sm:$0x1] %v913_v13  ;;  %v935_v16 = vadd.f32 %v934_v15, %v793_v14 }
 0x133   : > { %937 = vst [vmem:[%s342_s14] sm:$0x1] %v935_v16 }
 0x134 PF: > { %p11_p9 = scmp.ge.s32.totalorder %s1275_s16, 4   ;;  %s1380_s12 = smov %s1232_s13 }
 0x135   : > { %s1381_s13 = smov %s1284_s19  ;;  %s1382_s14 = smov %s1275_s16 }
 0x136   :  { %13 = sbr.rel (!%p11_p9) target bundleno = 2 (0x2), region = 119 }

</bundles_post_ra>
